<compile_context>
chip_gen: v5e
topology: v5e:2x2
jax: 0.10.0
libtpu: 0.0.40
codegen_flags: <defaults>
</compile_context>

<pallas_src>
import jax
import jax.numpy as jnp
from jax.experimental import pallas as pl
from jax.experimental.pallas import tpu as pltpu


def _sigmoid(g):
    # exp -> EUP; approximate reciprocal -> EUP (frees VALU slots vs. a divide).
    return pl.reciprocal(1.0 + jnp.exp(-g), approx=True)


def _make_temporal_kernel(B, c_in, c_out, Kt, N, T, bias_kind):
    """Build the fused TemporalCov kernel body for one static configuration.

    Ref shapes (all full-array VMEM blocks, lane-dense last dim):
      x_ref    : (B, c_in, T*N)
      wc_ref   : (2*c_out, Kt*c_in)     conv weight, rows ordered (k, c) to
                                        match the in-kernel im2col
      bc_ref   : (2*c_out, 1)           conv bias (column)
      bias_ref : (c_out, c_in)          if bias_kind == 'conv'  (c_in >  c_out)
                 (B, c_out-c_in, T*N)   if bias_kind == 'pad'   (c_in <  c_out)
                 absent                 if bias_kind == 'same'  (c_in == c_out)
      out_ref  : (B, c_out, T_out*N)
    """
    T_out = T - Kt + 1
    L = T_out * N

    def body(x_ref, wc_ref, bc_ref, bias_ref, out_ref):
        wc = wc_ref[...]
        bc = bc_ref[...]
        for b in range(B):  # B is tiny and static: unrolled at trace time
            # In-kernel im2col: Kt shifted (c_in, L) lane windows of the same
            # VMEM-resident input, stacked k-major along the sublane axis.
            xc = jnp.concatenate(
                [x_ref[b, :, k * N:k * N + L] for k in range(Kt)], axis=0)
            conv = jnp.dot(wc, xc, preferred_element_type=jnp.float32) + bc
            a = conv[:c_out, :]
            g = conv[c_out:, :]
            x_tail = x_ref[b, :, (Kt - 1) * N:]      # x[:, :, Kt-1:, :] flat
            if bias_kind == "conv":                  # c_in > c_out: 1x1 conv
                bias = jnp.dot(bias_ref[...], x_tail,
                               preferred_element_type=jnp.float32)
            elif bias_kind == "pad":                 # c_in < c_out: cat with P
                p_tail = bias_ref[b, :, (Kt - 1) * N:]
                bias = jnp.concatenate([x_tail, p_tail], axis=0)
            else:                                    # c_in == c_out: cat no-op
                bias = x_tail
            out_ref[b] = (a + bias) * _sigmoid(g)    # (c_out, L) lane-dense

    if bias_kind == "same":
        def body_nobias(x_ref, wc_ref, bc_ref, out_ref):
            return body(x_ref, wc_ref, bc_ref, None, out_ref)
        return body_nobias
    return body


def temporal_cov(x, params):
    """Pallas forward for TemporalCov.  x: (B, c_in, T, N) float32."""
    B, c_in, T, N = x.shape
    Kt, c_out = params["Kt"], params["c_out"]
    T_out = T - Kt + 1
    L, TN = T_out * N, T * N

    xf = x.reshape(B, c_in, TN)                  # contiguous dims: free reshape
    wc = params["Wc_flat"]                       # (2*c_out, Kt*c_in)
    bc = params["bc_col"]                        # (2*c_out, 1)

    def full(shape):
        return pl.BlockSpec(shape, lambda i: (0,) * len(shape))

    in_arrays = [xf, wc, bc]
    in_specs = [full((B, c_in, TN)),
                full((2 * c_out, Kt * c_in)),
                full((2 * c_out, 1))]

    if c_in > c_out:
        bias_kind = "conv"
        in_arrays.append(params["Bmat"])
        in_specs.append(full((c_out, c_in)))
    elif c_in < c_out:
        bias_kind = "pad"
        in_arrays.append(params["P_flat"])       # (B, c_out - c_in, TN)
        in_specs.append(full((B, c_out - c_in, TN)))
    else:
        bias_kind = "same"

    kernel = _make_temporal_kernel(B, c_in, c_out, Kt, N, T, bias_kind)

    out = pl.pallas_call(
        kernel,
        out_shape=jax.ShapeDtypeStruct((B, c_out, L), jnp.float32),
        grid=(1,),                               # single block: whole working
        in_specs=in_specs,                       # set (<100 KiB) VMEM-resident
        out_specs=full((B, c_out, L)),
        compiler_params=pltpu.CompilerParams(
            dimension_semantics=("arbitrary",)),
        # TODO(synk): on v7x a 2-wide 'parallel' grid over B would occupy the
        # second TensorCore; at these launch-bound sizes it is not worth it.
    )(*in_arrays)
    return out.reshape(B, c_out, T_out, N)       # contiguous: free reshape


# ----------------------------- parameters -----------------------------------

def build_temporal_cov_params(key, x_shape, Kt, c_out):
    B, c_in, T, N = x_shape
    k_w, k_b, k_m = jax.random.split(key, 3)
    Wc = 0.1 * jax.random.normal(k_w, (2 * c_out, c_in, Kt), jnp.float32)
    bc = 0.1 * jax.random.normal(k_b, (2 * c_out,), jnp.float32)
    params = dict(
        Kt=Kt, c_out=c_out, Wc=Wc, bc=bc,
        # pre-flattened kernel operands (hoisted out of the forward pass):
        # row index of Wc_flat is k*c_in + c, matching the in-kernel im2col.
        Wc_flat=jnp.transpose(Wc, (0, 2, 1)).reshape(2 * c_out, Kt * c_in),
        bc_col=bc.reshape(2 * c_out, 1),
    )
    if c_in > c_out:
        # nn.Conv2d(c_in, c_out, (1,1), bias=False)
        params["Bmat"] = 0.1 * jax.random.normal(k_m, (c_out, c_in), jnp.float32)
    elif c_in < c_out:
        # nn.Parameter is zero-initialised in the module; random values here so
        # the pad branch is genuinely exercised by the reference check.
        P = 0.1 * jax.random.normal(k_m, (B, c_out - c_in, T, N), jnp.float32)
        params["P"] = P
        params["P_flat"] = P.reshape(B, c_out - c_in, T * N)
    return params


# ----------------------- pure-JAX reference (for checking) ------------------

def temporal_cov_ref(x, params):
    Wc, bc, Kt, c_out = params["Wc"], params["bc"], params["Kt"], params["c_out"]
    B, c_in, T, N = x.shape
    T_out = T - Kt + 1
    conv = jnp.zeros((B, 2 * c_out, T_out, N), jnp.float32)
    for k in range(Kt):
        conv = conv + jnp.einsum("oc,bctn->botn", Wc[:, :, k],
                                 x[:, :, k:k + T_out, :])
    conv = conv + bc[None, :, None, None]
    a, g = conv[:, :c_out], conv[:, c_out:]
    if c_in > c_out:
        bias = jnp.einsum("oc,bctn->botn", params["Bmat"], x)
    elif c_in < c_out:
        bias = jnp.concatenate([x, params["P"]], axis=1)
    else:
        bias = x
    bias = bias[:, :, Kt - 1:, :]
    return (a + bias) * jax.nn.sigmoid(g)


# ---------------------------------- main -------------------------------------

if __name__ == "__main__":
    key = jax.random.PRNGKey(0)
    kx1, kp1, kx2, kp2 = jax.random.split(key, 4)

    # Config 1 (main): c_in < c_out  ->  learnable zero-pad Parameter bias.
    B, C, T, N = 2, 4, 16, 16
    Kt, c_out = 3, 8
    x1 = jax.random.normal(kx1, (B, C, T, N), jnp.float32)
    p1 = build_temporal_cov_params(kp1, (B, C, T, N), Kt, c_out)
    y1 = temporal_cov(x1, p1)
    r1 = temporal_cov_ref(x1, p1)

    # Config 2: c_in > c_out  ->  1x1 Conv2d bias branch.
    C2, c_out2 = 8, 4
    x2 = jax.random.normal(kx2, (B, C2, T, N), jnp.float32)
    p2 = build_temporal_cov_params(kp2, (B, C2, T, N), Kt, c_out2)
    y2 = temporal_cov(x2, p2)
    r2 = temporal_cov_ref(x2, p2)

    jax.block_until_ready((y1, y2))

    assert y1.shape == (B, c_out, T - Kt + 1, N)
    assert y2.shape == (B, c_out2, T - Kt + 1, N)
    assert bool(jnp.all(jnp.isfinite(y1))) and bool(jnp.all(jnp.isfinite(y2)))
    # tolerance covers the approximate (EUP) reciprocal in the sigmoid
    assert jnp.allclose(y1, r1, atol=1e-2, rtol=1e-2), \
        float(jnp.max(jnp.abs(y1 - r1)))
    assert jnp.allclose(y2, r2, atol=1e-2, rtol=1e-2), \
        float(jnp.max(jnp.abs(y2 - r2)))
    print("KERNEL_OK")
</pallas_src>

<mosaic_0001>
module attributes {stable_mosaic.version = 11 : i64} {
  func.func @body(%arg0: i32, %arg1: memref<2x4x256xf32, #tpu.memory_space<vmem>>, %arg2: memref<16x12xf32, #tpu.memory_space<vmem>>, %arg3: memref<16x1xf32, #tpu.memory_space<vmem>>, %arg4: memref<2x4x256xf32, #tpu.memory_space<vmem>>, %arg5: memref<2x8x224xf32, #tpu.memory_space<vmem>>) attributes {dimension_semantics = [#tpu.dimension_semantics<arbitrary>], iteration_bounds = array<i64: 1>, scalar_prefetch = 0 : i64, scratch_operands = 0 : i64, tpu.core_type = #tpu.core_type<tc>, window_params = [{pipeline_mode = #tpu.pipeline_mode<synchronous>, transform_indices = @transform_0, window_bounds = array<i64: 2, 4, 256>}, {pipeline_mode = #tpu.pipeline_mode<synchronous>, transform_indices = @transform_1, window_bounds = array<i64: 16, 12>}, {pipeline_mode = #tpu.pipeline_mode<synchronous>, transform_indices = @transform_2, window_bounds = array<i64: 16, 1>}, {pipeline_mode = #tpu.pipeline_mode<synchronous>, transform_indices = @transform_3, window_bounds = array<i64: 2, 4, 256>}, {pipeline_mode = #tpu.pipeline_mode<synchronous>, transform_indices = @transform_4, window_bounds = array<i64: 2, 8, 224>}]} {
    %c0 = arith.constant 0 : index
    %c0_0 = arith.constant 0 : index
    %0 = vector.load %arg2[%c0, %c0_0] : memref<16x12xf32, #tpu.memory_space<vmem>>, vector<16x12xf32>
    %c0_1 = arith.constant 0 : index
    %c0_2 = arith.constant 0 : index
    %1 = vector.load %arg3[%c0_1, %c0_2] : memref<16x1xf32, #tpu.memory_space<vmem>>, vector<16x1xf32>
    %c0_3 = arith.constant 0 : index
    %c0_4 = arith.constant 0 : index
    %c0_5 = arith.constant 0 : index
    %2 = vector.load %arg1[%c0_3, %c0_4, %c0_5] : memref<2x4x256xf32, #tpu.memory_space<vmem>>, vector<1x4x224xf32>
    %3 = vector.shape_cast %2 : vector<1x4x224xf32> to vector<4x224xf32>
    %c0_6 = arith.constant 0 : index
    %c0_7 = arith.constant 0 : index
    %c16 = arith.constant 16 : index
    %4 = vector.load %arg1[%c0_6, %c0_7, %c16] : memref<2x4x256xf32, #tpu.memory_space<vmem>>, vector<1x4x224xf32>
    %5 = vector.shape_cast %4 : vector<1x4x224xf32> to vector<4x224xf32>
    %c0_8 = arith.constant 0 : index
    %c0_9 = arith.constant 0 : index
    %c32 = arith.constant 32 : index
    %6 = vector.load %arg1[%c0_8, %c0_9, %c32] : memref<2x4x256xf32, #tpu.memory_space<vmem>>, vector<1x4x224xf32>
    %7 = vector.shape_cast %6 : vector<1x4x224xf32> to vector<4x224xf32>
    %8 = tpu.concatenate %3, %5, %7 in 0 : vector<4x224xf32>, vector<4x224xf32>, vector<4x224xf32> -> vector<12x224xf32>
    %cst = arith.constant dense<0.000000e+00> : vector<16x224xf32>
    %9 = tpu.matmul %0, %8, %cst {dimension_numbers = #tpu.dot_dimension_numbers<[1], [0], [0], [1], [0, 0, 1, 1], [], []>} : vector<16x12xf32>, vector<12x224xf32>, vector<16x224xf32> -> vector<16x224xf32>
    %10 = vector.broadcast %1 : vector<16x1xf32> to vector<16x224xf32>
    %11 = arith.addf %9, %10 : vector<16x224xf32>
    %12 = vector.extract_strided_slice %11 {offsets = [0, 0], sizes = [8, 224], strides = [1, 1]} : vector<16x224xf32> to vector<8x224xf32>
    %13 = vector.extract_strided_slice %11 {offsets = [8, 0], sizes = [8, 224], strides = [1, 1]} : vector<16x224xf32> to vector<8x224xf32>
    %c0_10 = arith.constant 0 : index
    %c0_11 = arith.constant 0 : index
    %c32_12 = arith.constant 32 : index
    %14 = vector.load %arg1[%c0_10, %c0_11, %c32_12] : memref<2x4x256xf32, #tpu.memory_space<vmem>>, vector<1x4x224xf32>
    %15 = vector.shape_cast %14 : vector<1x4x224xf32> to vector<4x224xf32>
    %c0_13 = arith.constant 0 : index
    %c0_14 = arith.constant 0 : index
    %c32_15 = arith.constant 32 : index
    %16 = vector.load %arg4[%c0_13, %c0_14, %c32_15] : memref<2x4x256xf32, #tpu.memory_space<vmem>>, vector<1x4x224xf32>
    %17 = vector.shape_cast %16 : vector<1x4x224xf32> to vector<4x224xf32>
    %18 = tpu.concatenate %15, %17 in 0 : vector<4x224xf32>, vector<4x224xf32> -> vector<8x224xf32>
    %19 = arith.addf %12, %18 : vector<8x224xf32>
    %cst_16 = arith.constant 0.000000e+00 : f32
    %20 = vector.broadcast %cst_16 : f32 to vector<8x224xf32>
    %21 = arith.subf %20, %13 : vector<8x224xf32>
    %22 = math.exp %21 : vector<8x224xf32>
    %cst_17 = arith.constant 1.000000e+00 : f32
    %23 = vector.broadcast %cst_17 : f32 to vector<8x224xf32>
    %24 = arith.addf %23, %22 : vector<8x224xf32>
    %25 = tpu.reciprocal %24 {approx = true} : vector<8x224xf32> -> vector<8x224xf32>
    %26 = arith.mulf %19, %25 : vector<8x224xf32>
    %c0_18 = arith.constant 0 : index
    %c0_19 = arith.constant 0 : index
    %c0_20 = arith.constant 0 : index
    %27 = vector.load %arg5[%c0_18, %c0_19, %c0_20] : memref<2x8x224xf32, #tpu.memory_space<vmem>>, vector<1x8x224xf32>
    %28 = vector.shape_cast %27 : vector<1x8x224xf32> to vector<8x224xf32>
    %29 = vector.shape_cast %26 : vector<8x224xf32> to vector<1x8x224xf32>
    tpu.vector_store %arg5[%c0_18, %c0_19, %c0_20], %29 {strides = array<i32>} : memref<2x8x224xf32, #tpu.memory_space<vmem>>, vector<1x8x224xf32>,
    %c1 = arith.constant 1 : index
    %c0_21 = arith.constant 0 : index
    %c0_22 = arith.constant 0 : index
    %30 = vector.load %arg1[%c1, %c0_21, %c0_22] : memref<2x4x256xf32, #tpu.memory_space<vmem>>, vector<1x4x224xf32>
    %31 = vector.shape_cast %30 : vector<1x4x224xf32> to vector<4x224xf32>
    %c1_23 = arith.constant 1 : index
    %c0_24 = arith.constant 0 : index
    %c16_25 = arith.constant 16 : index
    %32 = vector.load %arg1[%c1_23, %c0_24, %c16_25] : memref<2x4x256xf32, #tpu.memory_space<vmem>>, vector<1x4x224xf32>
    %33 = vector.shape_cast %32 : vector<1x4x224xf32> to vector<4x224xf32>
    %c1_26 = arith.constant 1 : index
    %c0_27 = arith.constant 0 : index
    %c32_28 = arith.constant 32 : index
    %34 = vector.load %arg1[%c1_26, %c0_27, %c32_28] : memref<2x4x256xf32, #tpu.memory_space<vmem>>, vector<1x4x224xf32>
    %35 = vector.shape_cast %34 : vector<1x4x224xf32> to vector<4x224xf32>
    %36 = tpu.concatenate %31, %33, %35 in 0 : vector<4x224xf32>, vector<4x224xf32>, vector<4x224xf32> -> vector<12x224xf32>
    %cst_29 = arith.constant dense<0.000000e+00> : vector<16x224xf32>
    %37 = tpu.matmul %0, %36, %cst_29 {dimension_numbers = #tpu.dot_dimension_numbers<[1], [0], [0], [1], [0, 0, 1, 1], [], []>} : vector<16x12xf32>, vector<12x224xf32>, vector<16x224xf32> -> vector<16x224xf32>
    %38 = vector.broadcast %1 : vector<16x1xf32> to vector<16x224xf32>
    %39 = arith.addf %37, %38 : vector<16x224xf32>
    %40 = vector.extract_strided_slice %39 {offsets = [0, 0], sizes = [8, 224], strides = [1, 1]} : vector<16x224xf32> to vector<8x224xf32>
    %41 = vector.extract_strided_slice %39 {offsets = [8, 0], sizes = [8, 224], strides = [1, 1]} : vector<16x224xf32> to vector<8x224xf32>
    %c1_30 = arith.constant 1 : index
    %c0_31 = arith.constant 0 : index
    %c32_32 = arith.constant 32 : index
    %42 = vector.load %arg1[%c1_30, %c0_31, %c32_32] : memref<2x4x256xf32, #tpu.memory_space<vmem>>, vector<1x4x224xf32>
    %43 = vector.shape_cast %42 : vector<1x4x224xf32> to vector<4x224xf32>
    %c1_33 = arith.constant 1 : index
    %c0_34 = arith.constant 0 : index
    %c32_35 = arith.constant 32 : index
    %44 = vector.load %arg4[%c1_33, %c0_34, %c32_35] : memref<2x4x256xf32, #tpu.memory_space<vmem>>, vector<1x4x224xf32>
    %45 = vector.shape_cast %44 : vector<1x4x224xf32> to vector<4x224xf32>
    %46 = tpu.concatenate %43, %45 in 0 : vector<4x224xf32>, vector<4x224xf32> -> vector<8x224xf32>
    %47 = arith.addf %40, %46 : vector<8x224xf32>
    %cst_36 = arith.constant 0.000000e+00 : f32
    %48 = vector.broadcast %cst_36 : f32 to vector<8x224xf32>
    %49 = arith.subf %48, %41 : vector<8x224xf32>
    %50 = math.exp %49 : vector<8x224xf32>
    %cst_37 = arith.constant 1.000000e+00 : f32
    %51 = vector.broadcast %cst_37 : f32 to vector<8x224xf32>
    %52 = arith.addf %51, %50 : vector<8x224xf32>
    %53 = tpu.reciprocal %52 {approx = true} : vector<8x224xf32> -> vector<8x224xf32>
    %54 = arith.mulf %47, %53 : vector<8x224xf32>
    %c1_38 = arith.constant 1 : index
    %c0_39 = arith.constant 0 : index
    %c0_40 = arith.constant 0 : index
    %55 = vector.load %arg5[%c1_38, %c0_39, %c0_40] : memref<2x8x224xf32, #tpu.memory_space<vmem>>, vector<1x8x224xf32>
    %56 = vector.shape_cast %55 : vector<1x8x224xf32> to vector<8x224xf32>
    %57 = vector.shape_cast %54 : vector<8x224xf32> to vector<1x8x224xf32>
    tpu.vector_store %arg5[%c1_38, %c0_39, %c0_40], %57 {strides = array<i32>} : memref<2x8x224xf32, #tpu.memory_space<vmem>>, vector<1x8x224xf32>,
    return
  }
  func.func @transform_0(%arg0: i32) -> (i32, i32, i32) {
    %c0_i32 = arith.constant 0 : i32
    %c0_i32_0 = arith.constant 0 : i32
    %c0_i32_1 = arith.constant 0 : i32
    %c0_i32_2 = arith.constant 0 : i32
    return %c0_i32, %c0_i32_0, %c0_i32_1 : i32, i32, i32
  }
  func.func @transform_1(%arg0: i32) -> (i32, i32) {
    %c0_i32 = arith.constant 0 : i32
    %c0_i32_0 = arith.constant 0 : i32
    %c0_i32_1 = arith.constant 0 : i32
    return %c0_i32, %c0_i32_0 : i32, i32
  }
  func.func @transform_2(%arg0: i32) -> (i32, i32) {
    %c0_i32 = arith.constant 0 : i32
    %c0_i32_0 = arith.constant 0 : i32
    %c0_i32_1 = arith.constant 0 : i32
    return %c0_i32, %c0_i32_0 : i32, i32
  }
  func.func @transform_3(%arg0: i32) -> (i32, i32, i32) {
    %c0_i32 = arith.constant 0 : i32
    %c0_i32_0 = arith.constant 0 : i32
    %c0_i32_1 = arith.constant 0 : i32
    %c0_i32_2 = arith.constant 0 : i32
    return %c0_i32, %c0_i32_0, %c0_i32_1 : i32, i32, i32
  }
  func.func @transform_4(%arg0: i32) -> (i32, i32, i32) {
    %c0_i32 = arith.constant 0 : i32
    %c0_i32_0 = arith.constant 0 : i32
    %c0_i32_1 = arith.constant 0 : i32
    %c0_i32_2 = arith.constant 0 : i32
    return %c0_i32, %c0_i32_0, %c0_i32_1 : i32, i32, i32
  }
}

</mosaic_0001>

<bundles_post_ra>
// kernel: tpu_custom_call.1
= control target key start
LH: loop header
LB: loop body
LE: loop exit
PB: predicated region body
PF: predicated region fallthrough
CT: control target
= control target key end

     0   :  { %9 = vsyncpa [#allocation3], 0  ;;  %s563_s0 = inlined_call_operand.vmem [shape: f32[2,4,256], index: 0, kind: input, shape index: {}]   ;;  %s564_s1 = inlined_call_operand.hbm [shape: f32[16,12], index: 1, kind: input, shape index: {}]   ;;  %s565_s2 = inlined_call_operand.vmem [shape: f32[16,1], index: 2, kind: input, shape index: {}]   ;;  %s566_s3 = inlined_call_operand.hbm [shape: f32[2,4,256], index: 3, kind: input, shape index: {}]   ;;  %s567_s4 = inlined_call_operand.hbm [shape: f32[2,8,224], index: 4, kind: output, shape index: {}]  }
   0x1   :  { %10 = vsyncpa [#allocation6], 0 }
   0x2   :  { %11 = vsyncpa [#allocation4], 0  ;;  %s18_s17 = sshll.u32 %s564_s1, 4  ;;  %s462_s18 = smov [#allocation2]   ;;  %s19_s17 = int_to_ptr.hbm [resolvable:$true] %s18_s17 }
   0x3   :  { %s20_s19 = sshll.u32 %s462_s18, 4  ;;  %s33_s22 = sshll.u32 %s566_s3, 4  ;;  %s21_s19 = int_to_ptr.vmem [resolvable:$true] %s20_s19  ;;  %s34_s22 = int_to_ptr.hbm [resolvable:$true] %s33_s22 }
   0x4   :  { %s463_s23 = smov 128   ;;  %s464_s24 = smov 8  }
   0x5   :  { %26 = dma.hbm_to_vmem [thread:$0]  %s19_s17, 256, %s21_s19, [#allocation3], %s463_s23, %s463_s23, %s464_s24  }
   0x6   :  { %s465_s25 = smov [#allocation5]  }
   0x7   :  { %s35_s26 = sshll.u32 %s465_s25, 4  ;;  %s36_s26 = int_to_ptr.vmem [resolvable:$true] %s35_s26 }
   0x8   :  { %41 = dma.hbm_to_vmem [thread:$0]  %s34_s22, 256, %s36_s26, [#allocation6], %s463_s23, %s463_s23, %s464_s24  }
   0x9   :  { %456 = dma.done.wait [#allocation3], 256  }
   0xa   :  { %457 = vsyncadd [#allocation3], 4294967040 }
   0xb   :  { %458 = dma.done.wait [#allocation6], 256  }
   0xc   :  { %459 = vsyncadd [#allocation6], 4294967040  ;;  %v54_v0 = vld [vmem:[%s563_s0] sm:$0xff]  ;;  %s466_s3 = smov 96   ;;  %v152_v7 = vld [vmem:[#allocation5] sm:$0xff]  ;;  %s467_s30 = smov 112  }
   0xd   :  { %56 = vst [vmem:[#allocation1] ss:$2 sm:$0xff] %v54_v0  ;;  %v339_v10 = vld [vmem:[%s563_s0 + $0x8] sm:$0xff]  ;;  %vm82_vm0 = vcmask 1043456   ;;  %vm95_vm1 = vcmask 97280   ;;  %v51_v26 = vld [vmem:[#allocation2 + $0x8] sm:$0xff] }
   0xe   :  { %v50_v24 = vld [vmem:[#allocation2] sm:$0xff]  ;;  %v468_v27 = vmov 0   ;;  %v52_v29 = vld [vmem:[%s565_s2] sm:$0xff]  ;;  %vm69_vm2 = vcmask 916480   ;;  %vm80_vm3 = vcmask 785408   ;;  %s319_s11 = sshll.u32 %s567_s4, 4  ;;  %s320_s11 = int_to_ptr.hbm [resolvable:$true] %s319_s11 }
   0xf   :  { %366 = vset.pattern.permute.xlu0 %v468_v27  ;;  %v53_v28 = vld [vmem:[%s565_s2 + $0x8] sm:$0xff]  ;;  %367 = vset.pattern.permute.xlu1 %v468_v27  ;;  %v272_v30 = vld [vmem:[#allocation5 + $0x8] sm:$0xff]  ;;  %s469_s2 = smov [#allocation7]   ;;  %s470_s12 = smov 256  }
  0x10   :  { %s317_s8 = sshll.u32 %s469_s2, 4  ;;  %s471_s13 = smov 16   ;;  %s318_s8 = int_to_ptr.vmem [resolvable:$true] %s317_s8 }
  0x14   :  { %v506_v1 = vld.sshfl [vmem:[#allocation1] sm:$0xff pattern:$0x75316420]  ;;  %v58_v2 = vld.sshfl [vmem:[#allocation1 + $0x8] sm:$0xff pattern:$0x75316420] }
  0x15   :  { %62 = vst [vmem:[#allocation1 + $0x1] ss:$2 sm:$0xff] %v54_v0 }
  0x1c   :  { %v63_v3 = vld.sshfl [vmem:[#allocation1] sm:$0xff pattern:$0x75316420]  ;;  %v64_v4 = vld.sshfl [vmem:[#allocation1 + $0x8] sm:$0xff pattern:$0x75316420] }
  0x1d   :  { %73 = vst [vmem:[#allocation1] ss:$2 sm:$0xff] %v54_v0  ;;  %v361_v13 = vpack.i.bf16 %v64_v4, %v63_v3 }
  0x24   :  { %v74_v5 = vld.sshfl [vmem:[#allocation1] sm:$0xff pattern:$0x75316420]  ;;  %v75_v6 = vld.sshfl [vmem:[#allocation1 + $0x8] sm:$0xff pattern:$0x75316420] }
  0x25   :  { %153 = vst [vmem:[#allocation1] ss:$2 sm:$0xff] %v54_v0  ;;  %78 = vrot.lane.b32.xlu2 %v75_v6, %s466_s3 }
  0x2c   :  { %v154_v8 = vld.sshfl [vmem:[#allocation1] sm:$0xff pattern:$0x75316420]  ;;  %v155_v9 = vld.sshfl [vmem:[#allocation1 + $0x8] sm:$0xff pattern:$0x75316420] }
  0x2d   :  { %160 = vst [vmem:[#allocation1 + $0x1] ss:$2 sm:$0xff] %v152_v7  ;;  %362 = vrot.lane.b32.xlu2 %v361_v13, %s467_s30 }
  0x34   :  { %v161_v11 = vld.sshfl [vmem:[#allocation1] sm:$0xff pattern:$0x75316420]  ;;  %v162_v12 = vld.sshfl [vmem:[#allocation1 + $0x8] sm:$0xff pattern:$0x75316420] }
  0x35   :  { %195 = vst [vmem:[#allocation1] ss:$2 sm:$0xff] %v339_v10  ;;  %v165_v32 = vsel %vm82_vm0, %v154_v8, %v161_v11  ;;  %v166_v35 = vsel %vm82_vm0, %v155_v9, %v162_v12 }
  0x36   :  { %169 = vrot.lane.b32.xlu2 %v165_v32, %s466_s3 }
  0x3c   :  { %v512_v14 = vld.sshfl [vmem:[#allocation1] sm:$0xff pattern:$0x75316420]  ;;  %v514_v15 = vld.sshfl [vmem:[#allocation1 + $0x8] sm:$0xff pattern:$0x75316420] }
  0x3d   :  { %201 = vst [vmem:[#allocation1 + $0x1] ss:$2 sm:$0xff] %v339_v10 }
  0x44   :  { %v202_v16 = vld.sshfl [vmem:[#allocation1] sm:$0xff pattern:$0x75316420]  ;;  %v203_v17 = vld.sshfl [vmem:[#allocation1 + $0x8] sm:$0xff pattern:$0x75316420] }
  0x45   :  { %v356_v18 = vpack.i.bf16 %v203_v17, %v202_v16  ;;  %211 = vst [vmem:[#allocation1] ss:$2 sm:$0xff] %v339_v10 }
  0x47   :  { %357 = vrot.lane.b32.xlu1 %v356_v18, %s467_s30 }
  0x4c   :  { %v212_v19 = vld.sshfl [vmem:[#allocation1] sm:$0xff pattern:$0x75316420]  ;;  %v213_v20 = vld.sshfl [vmem:[#allocation1 + $0x8] sm:$0xff pattern:$0x75316420] }
  0x4d   :  { %214 = vrot.lane.b32.xlu0 %v212_v19, %s466_s3  ;;  %273 = vst [vmem:[#allocation1] ss:$2 sm:$0xff] %v339_v10 }
  0x4f   :  { %76 = vrot.lane.b32.xlu1 %v74_v5, %s466_s3 }
  0x54   :  { %v274_v31 = vld.sshfl [vmem:[#allocation1] sm:$0xff pattern:$0x75316420]  ;;  %v275_v33 = vld.sshfl [vmem:[#allocation1 + $0x8] sm:$0xff pattern:$0x75316420] }
  0x55   :  { %216 = vrot.lane.b32.xlu0 %v213_v20, %s466_s3  ;;  %280 = vst [vmem:[#allocation1 + $0x1] ss:$2 sm:$0xff] %v272_v30 }
  0x57   :  { %87 = vperm.xlu1 %367, %v52_v29  }
  0x5c   :  { %v282_v37 = vld.sshfl [vmem:[#allocation1 + $0x8] sm:$0xff pattern:$0x75316420]  ;;  %v281_v38 = vld.sshfl [vmem:[#allocation1] sm:$0xff pattern:$0x75316420] }
  0x5d   :  { %92 = vperm.xlu0 %366, %v53_v28   ;;  %v286_v39 = vsel %vm82_vm0, %v275_v33, %v282_v37  ;;  %v285_v40 = vsel %vm82_vm0, %v274_v31, %v281_v38 }
  0x5e   :  { %289 = vrot.lane.b32.xlu2 %v285_v40, %s466_s3 }
  0x5f   :  { %171 = vrot.lane.b32.xlu1 %v166_v35, %s466_s3 }
  0x65   :  { %291 = vrot.lane.b32.xlu0 %v286_v39, %s466_s3 }
  0x7f   :  { %v79_v21 = vpop.permute.xlu2 %78 }
  0x80   :  { %336 = vmatpush.msk.msra.mxu1 %vm82_vm0, %v79_v21 }
  0x87   :  { %v363_v22 = vpop.permute.xlu2 %362 }
  0x88   :  { %v365_v23 = vunpack.i.h.bf16 %v363_v22  ;;  %v364_v36 = vunpack.i.l.bf16 %v363_v22 }
  0x8a   :  { %v84_v25 = vsel %vm82_vm0, %v58_v2, %v365_v23  ;;  %v70_v42 = vsel %vm69_vm2, %v364_v36, %v365_v23 }
  0x8b   :  { %144 = vmatpush.msra.mxu1 %v84_v25  ;;  %v83_v47 = vsel %vm82_vm0, %v506_v1, %v70_v42 }
  0x8c   :  { %337 = vmatmul.msk.f32.vlgmr.msra.gmra.mxu1 %vm95_vm1, %v50_v24 }
  0x90   :  { %v170_v19 = vpop.permute.xlu2 %169 }
  0x94   :  { %338 = vmatmul.msk.f32.gmra.mxu1 %vm95_vm1, %v51_v26 }
  0xb8   :  { %v290_v30 = vpop.permute.xlu2 %289 }
  0xb9   :  { %v358_v34 = vpop.permute.xlu1 %357 }
  0xba   :  { %v360_v43 = vunpack.i.h.bf16 %v358_v34  ;;  %v359_v44 = vunpack.i.l.bf16 %v358_v34 }
  0xbc   :  { %v208_v48 = vsel %vm69_vm2, %v359_v44, %v360_v43  ;;  %v220_v50 = vsel %vm82_vm0, %v514_v15, %v360_v43 }
  0xbd   :  { %v219_v52 = vsel %vm82_vm0, %v512_v14, %v208_v48 }
  0xbf   :  { %v215_v41 = vpop.permute.xlu0 %214 }
  0xc1   :  { %v77_v45 = vpop.permute.xlu1 %76 }
  0xc2   :  { %v81_v46 = vsel %vm80_vm3, %v77_v45, %v79_v21 }
  0xc3   :  { %333 = vmatpush.msk.msra.mxu0 %vm82_vm0, %v81_v46 }
  0xc5   :  { %121 = vmatpush.msra.mxu0 %v83_v47 }
  0xc6   :  { %334 = vmatmul.msk.f32.vlgmr.msra.gmra.mxu0 %vm95_vm1, %v50_v24 }
  0xc7   :  { %v217_v49 = vpop.permute.xlu0 %216 }
  0xc8   :  { %343 = vmatpush.msk.msra.mxu3 %vm82_vm0, %v217_v49  ;;  %v218_v51 = vsel %vm80_vm3, %v215_v41, %v217_v49 }
  0xc9   :  { %340 = vmatpush.msk.msra.mxu2 %vm82_vm0, %v218_v51  ;;  %v88_v59 = vpop.permute.xlu1 %87 }
  0xca   :  { %263 = vmatpush.msra.mxu3 %v220_v50 }
  0xcb   :  { %240 = vmatpush.msra.mxu2 %v219_v52  ;;  %344 = vmatmul.msk.f32.vlgmr.msra.gmra.mxu3 %vm95_vm1, %v50_v24 }
  0xcc   :  { %341 = vmatmul.msk.f32.vlgmr.msra.gmra.mxu2 %vm95_vm1, %v50_v24 }
  0xce   :  { %335 = vmatmul.msk.f32.gmra.mxu0 %vm95_vm1, %v51_v26 }
  0xcf   :  { %v93_v54 = vpop.permute.xlu0 %92 }
  0xd1   :  { %v172_v62 = vpop.permute.xlu1 %171 }
  0xd2   :  { %v173_v22 = vsel %vm80_vm3, %v170_v19, %v172_v62 }
  0xd3   :  { %345 = vmatmul.msk.f32.gmra.mxu3 %vm95_vm1, %v51_v26 }
  0xd4   :  { %342 = vmatmul.msk.f32.gmra.mxu2 %vm95_vm1, %v51_v26 }
  0xd7   :  { %v292_v31 = vpop.permute.xlu0 %291 }
  0xd8   :  { %v293_v34 = vsel %vm80_vm3, %v290_v30, %v292_v31 }
 0x109   :  { %v146_v53 = vpop.f32.mrf.mxu1 }
 0x10a   :  { %v147_v63 = vadd.f32 %v146_v53, %v88_v59 }
 0x10c   :  { %v177_v0 = vadd.f32 %v172_v62, %v147_v63 }
 0x111   :  { %v149_v55 = vpop.f32.mrf.mxu1 }
 0x112   :  { %v150_v56 = vadd.f32 %v149_v55, %v93_v54 }
 0x114   :  { %v179_v57 = vsub.f32 0.0, %v150_v56 }
 0x116   :  { %v182_v58 = vmul.f32 1.442695, %v179_v57 }
 0x118   :  { %368 = vpow2.f32 %v182_v58 }
 0x11e   :  { %v369_v60 = vpop.eup %368 }
 0x11f   :  { %v185_v61 = vadd.f32 1.0, %v369_v60 }
 0x121   :  { %370 = vrcp.f32 %v185_v61 }
 0x127   :  { %v371_v1 = vpop.eup %370 }
 0x128   :  { %v189_v2 = vmul.f32 %v371_v1, %v177_v0 }
 0x12a   :  { %191 = vst.msk [vmem:[#allocation7 + $0x8] sm:$0xff] %vm80_vm3, %v189_v2 }
 0x143   :  { %v123_v3 = vpop.f32.mrf.mxu0 }
 0x144   :  { %v124_v20 = vadd.f32 %v123_v3, %v88_v59 }
 0x146   :  { %v176_v23 = vadd.f32 %v173_v22, %v124_v20 }
 0x14b   :  { %v126_v4 = vpop.f32.mrf.mxu0 }
 0x14c   :  { %v127_v5 = vadd.f32 %v126_v4, %v93_v54 }
 0x14e   :  { %v178_v6 = vsub.f32 0.0, %v127_v5  ;;  %v265_v7 = vpop.f32.mrf.mxu3 }
 0x14f   :  { %v242_v8 = vpop.f32.mrf.mxu2  ;;  %v266_v32 = vadd.f32 %v265_v7, %v88_v59 }
 0x150   :  { %v180_v9 = vmul.f32 1.442695, %v178_v6  ;;  %v243_v33 = vadd.f32 %v242_v8, %v88_v59 }
 0x151   :  { %v297_v35 = vadd.f32 %v292_v31, %v266_v32 }
 0x152   :  { %372 = vpow2.f32 %v180_v9  ;;  %v296_v37 = vadd.f32 %v293_v34, %v243_v33 }
 0x156   :  { %v268_v10 = vpop.f32.mrf.mxu3 }
 0x157   :  { %v269_v11 = vadd.f32 %v268_v10, %v93_v54  ;;  %v245_v12 = vpop.f32.mrf.mxu2 }
 0x158   :  { %v373_v13 = vpop.eup %372  ;;  %v246_v14 = vadd.f32 %v245_v12, %v93_v54 }
 0x159   :  { %v184_v15 = vadd.f32 1.0, %v373_v13  ;;  %v299_v16 = vsub.f32 0.0, %v269_v11 }
 0x15a   :  { %v298_v17 = vsub.f32 0.0, %v246_v14 }
 0x15b   :  { %374 = vrcp.f32 %v184_v15  ;;  %v302_v18 = vmul.f32 1.442695, %v299_v16 }
 0x15c   :  { %v300_v21 = vmul.f32 1.442695, %v298_v17 }
 0x15d   :  { %376 = vpow2.f32 %v302_v18 }
 0x15e   :  { %378 = vpow2.f32 %v300_v21 }
 0x161   :  { %v375_v24 = vpop.eup %374 }
 0x162   :  { %v188_v25 = vmul.f32 %v375_v24, %v176_v23 }
 0x163   :  { %v377_v26 = vpop.eup %376 }
 0x164   :  { %v379_v27 = vpop.eup %378  ;;  %190 = vst [vmem:[#allocation7] sm:$0xff] %v188_v25  ;;  %v305_v28 = vadd.f32 1.0, %v377_v26 }
 0x165   :  { %v304_v29 = vadd.f32 1.0, %v379_v27 }
 0x166   :  { %380 = vrcp.f32 %v305_v28 }
 0x167   :  { %382 = vrcp.f32 %v304_v29 }
 0x16c   :  { %v381_v36 = vpop.eup %380 }
 0x16d   :  { %v383_v38 = vpop.eup %382  ;;  %v309_v39 = vmul.f32 %v381_v36, %v297_v35 }
 0x16e   :  { %v308_v40 = vmul.f32 %v383_v38, %v296_v37 }
 0x16f   :  { %312 = vst.msk [vmem:[#allocation7 + $0x18] sm:$0xff] %vm80_vm3, %v309_v39 }
 0x170   :  { %311 = vst [vmem:[#allocation7 + $0x10] sm:$0xff] %v308_v40 }
 0x171   :  { %325 = dma.vmem_to_hbm [thread:$0]  %s318_s8, 512, %s320_s11, [#allocation4], %s470_s12, %s470_s12, %s471_s13  }
 0x172   :  { %460 = dma.done.wait [#allocation4], 512  }
 0x173   :  { %461 = vsyncadd [#allocation4], 4294966784 }
 0x174   :  { %330 = vsyncpa [#allocation3], 1 }
 0x175   :  { %331 = vsyncpa [#allocation6], 1 }
 0x176   :  { %332 = vsyncpa [#allocation4], 1 }

</bundles_post_ra>
